<compile_context>
chip_gen: v6e
topology: v6e:2x2x1
jax: 0.10.0
libtpu: 0.0.40
codegen_flags: <defaults>
</compile_context>

<pallas_src>
import functools

import jax
import jax.numpy as jnp
from jax import lax
from jax.experimental import pallas as pl
from jax.experimental.pallas import tpu as pltpu

# One grid step holds 2 inputs x 2 pipeline buffers at the input dtype plus
# ~_F32_TEMPS block-sized f32 intermediates (d, hd, hsum, hs, shifted views,
# a, b, e1/e2, esq).  _TARGET_BLOCK_BYTES bounds that estimate per step and
# _VMEM_LIMIT_BYTES is what we request from the compiler.
_F32_TEMPS = 10
_TARGET_BLOCK_BYTES = 24 * 1024 * 1024
_VMEM_LIMIT_BYTES = 48 * 1024 * 1024


def _edge_loss_bce_kernel(yhat_ref, y_ref, out_ref, *, batch, tile_b, masked_tail):
    # yhat_ref / y_ref: (tb, H, W) blocks; all math is f32 inside VMEM.
    yhat = yhat_ref[...].astype(jnp.float32)
    y = y_ref[...].astype(jnp.float32)
    tb, h, w = yhat.shape

    if masked_tail:
        # cdiv grid: the last block may read past B.  Fill those images with
        # yhat = y = 1, which contributes exactly 0 to both partial sums
        # (log(1) = 0, (1-y)*clamp = 0, d = 0) and never propagates NaNs.
        first = pl.program_id(0) * tile_b
        img = first + lax.broadcasted_iota(jnp.int32, (tb, 1, 1), 0)
        valid = img < batch
        yhat = jnp.where(valid, yhat, 1.0)
        y = jnp.where(valid, y, 1.0)

    # ---- BCE partial, reduced immediately so its temporaries die before the
    # shift-heavy edge section (smaller live set -> less spill). ------------
    log_p = jnp.maximum(jnp.log(yhat), -100.0)           # nn.BCELoss clamp
    log_1mp = jnp.maximum(jnp.log(1.0 - yhat), -100.0)
    # y*log(p) + (1-y)*log(1-p) == y*(log_p - log_1mp) + log_1mp  (1 fewer mul)
    bce_sum = jnp.sum(y * (log_p - log_1mp) + log_1mp)

    # ---- Edge partial on the difference (filters are linear, so
    # MSE(conv(yhat), conv(y)) == mean(conv(yhat - y)^2)). -------------------
    d = yhat - y

    # Shifted-neighbour views with a zero halo.  When the block is
    # (8,128)-tile aligned, use XLU rotates + hoisted boundary masks (VALU is
    # the binding slot on v6e/v7x, XLU has slack); otherwise fall back to
    # zero-slab concatenation, which lowers for any shape.
    # TODO(synk): A/B the two shift paths with a bundle dump (review item).
    if h % 8 == 0 and w % 128 == 0:
        col = lax.broadcasted_iota(jnp.int32, (1, 1, w), 2)
        row = lax.broadcasted_iota(jnp.int32, (1, h, 1), 1)
        not_first_col = col != 0
        not_last_col = col != (w - 1)
        not_first_row = row != 0
        not_last_row = row != (h - 1)

        def left(x):   # x[:, :, j-1], zero at j == 0
            return jnp.where(not_first_col, pltpu.roll(x, 1, 2), 0.0)

        def right(x):  # x[:, :, j+1], zero at j == w-1
            return jnp.where(not_last_col, pltpu.roll(x, w - 1, 2), 0.0)

        def up(x):     # x[:, i-1, :], zero at i == 0
            return jnp.where(not_first_row, pltpu.roll(x, 1, 1), 0.0)

        def down(x):   # x[:, i+1, :], zero at i == h-1
            return jnp.where(not_last_row, pltpu.roll(x, h - 1, 1), 0.0)
    else:
        zcol = jnp.zeros((tb, h, 1), jnp.float32)
        zrow = jnp.zeros((tb, 1, w), jnp.float32)

        def left(x):
            return jnp.concatenate([zcol, x[:, :, : w - 1]], axis=2)

        def right(x):
            return jnp.concatenate([x[:, :, 1:], zcol], axis=2)

        def up(x):
            return jnp.concatenate([zrow, x[:, : h - 1, :]], axis=1)

        def down(x):
            return jnp.concatenate([x[:, 1:, :], zrow], axis=1)

    d_l = left(d)
    d_r = right(d)
    hd = d_r - d_l          # [-1, 0, 1]   horizontal difference
    hsum = d_l + d + d_r    # [ 1, 1, 1]   horizontal sum
    hs = hsum + d           # [ 1, 2, 1]   horizontal smooth

    a = up(hd) + hd + down(hd)      # [1,1,1]^T (x) [-1,0,1]
    e1 = a + hd                     # [1,2,1]^T (x) [-1,0,1]  (Sobel-x)
    e2 = down(hs) - up(hs)          # [-1,0,1]^T (x) [1,2,1]  (Sobel-y)
    b = up(hsum) - down(hsum)       # [1,0,-1]^T (x) [1,1,1]
    # edge3 = a + b, edge4 = a - b  =>  e3^2 + e4^2 == 2 * (a^2 + b^2)
    esq_sum = jnp.sum(e1 * e1 + e2 * e2 + 2.0 * (a * a + b * b))

    # Lane-dense (2, 128) partial block: sublane 0 = edge partial, sublane 1 =
    # BCE partial.  alpha / sign / mean are applied once in the wrapper.
    which = lax.broadcasted_iota(jnp.int32, (2, 128), 0)
    out_ref[...] = jnp.where(which == 0, esq_sum, bce_sum)


def _pick_batch_tile(batch, h, w, in_itemsize):
    """Largest batch tile under the VMEM budget, while keeping at least 2
    (preferably 4, even) grid steps so v7x's 2 TCs both get work."""
    per_image = h * w * (4 * in_itemsize + _F32_TEMPS * 4)
    if per_image > _VMEM_LIMIT_BYTES:
        # TODO(synk): add H-row tiling with a 1-row halo for huge images.
        raise ValueError(
            f"a single {h}x{w} image needs ~{per_image} bytes of VMEM, over "
            f"the {_VMEM_LIMIT_BYTES} byte scoped limit; row tiling is not "
            "implemented")
    cap = max(1, _TARGET_BLOCK_BYTES // per_image)
    nb = max(pl.cdiv(batch, cap), min(batch, 4))   # >= 2 blocks when batch >= 2
    if nb % 2 and nb < batch:                      # prefer an even block count
        nb += 1
    return pl.cdiv(batch, nb)


@functools.partial(jax.jit, static_argnames=("alpha",))
def edge_loss_bce(yhat, y, alpha=0.5):
    """yhat, y: NCHW maps in [0, 1] (any real dtype; e.g. pass y as bfloat16
    to halve its HBM traffic on v5e - math is f32 in VMEM).  Scalar loss."""
    N, C, H, W = yhat.shape
    B = N * C
    yhat_f = yhat.reshape(B, H, W)      # free fold: no pad, no dtype cast
    y_f = y.reshape(B, H, W)

    itemsize = max(yhat_f.dtype.itemsize, y_f.dtype.itemsize)
    tb = _pick_batch_tile(B, H, W, itemsize)
    nb = pl.cdiv(B, tb)
    masked_tail = (B % tb) != 0

    kernel = functools.partial(_edge_loss_bce_kernel, batch=B, tile_b=tb,
                               masked_tail=masked_tail)
    cost = pl.CostEstimate(
        flops=int(30 * B * H * W),
        transcendentals=int(2 * B * H * W),
        bytes_accessed=int(B * H * W * (yhat_f.dtype.itemsize + y_f.dtype.itemsize)
                           + nb * 2 * 128 * 4),
    )

    partials = pl.pallas_call(
        kernel,
        out_shape=jax.ShapeDtypeStruct((nb, 2, 128), jnp.float32),
        grid=(nb,),
        in_specs=[
            pl.BlockSpec((tb, H, W), lambda i: (i, 0, 0)),
            pl.BlockSpec((tb, H, W), lambda i: (i, 0, 0)),
        ],
        out_specs=pl.BlockSpec((None, 2, 128), lambda i: (i, 0, 0)),
        compiler_params=pltpu.CompilerParams(
            dimension_semantics=("parallel",),
            vmem_limit_bytes=_VMEM_LIMIT_BYTES),
        cost_estimate=cost,
    )(yhat_f, y_f)

    # Row 0 = sum(e1^2+e2^2+e3^2+e4^2), row 1 = sum(y*log p + (1-y)*log(1-p)).
    esq_total = jnp.sum(partials[:, 0, 0])
    bce_total = jnp.sum(partials[:, 1, 0])
    denom = jnp.float32(B * H * W)
    return (jnp.float32(alpha) * esq_total - bce_total) / denom


# ----------------------------- pure-JAX reference ---------------------------
def _conv3x3_same(x, k):
    """Depthwise 3x3 conv, zero padding=1.  x: (B, H, W), k: 3x3 nested list."""
    h, w = x.shape[1], x.shape[2]
    xp = jnp.pad(x, ((0, 0), (1, 1), (1, 1)))
    out = jnp.zeros_like(x)
    for r in range(3):
        for c in range(3):
            out = out + k[r][c] * xp[:, r:r + h, c:c + w]
    return out


def _edge_loss_bce_ref(yhat, y, alpha):
    n, c, h, w = yhat.shape
    p = yhat.reshape(n * c, h, w).astype(jnp.float32)
    t = y.reshape(n * c, h, w).astype(jnp.float32)
    log_p = jnp.maximum(jnp.log(p), -100.0)
    log_1mp = jnp.maximum(jnp.log(1.0 - p), -100.0)
    bce = -jnp.mean(t * log_p + (1.0 - t) * log_1mp)
    filters = [
        [[-1, 0, 1], [-2, 0, 2], [-1, 0, 1]],    # Sobel-x
        [[-1, -2, -1], [0, 0, 0], [1, 2, 1]],    # Sobel-y
        [[0, 1, 2], [-1, 0, 1], [-2, -1, 0]],    # diagonal
        [[-2, -1, 0], [-1, 0, 1], [0, 1, 2]],    # anti-diagonal
    ]
    edge = 0.0
    for k in filters:
        edge = edge + jnp.mean((_conv3x3_same(p, k) - _conv3x3_same(t, k)) ** 2)
    return alpha * edge + bce


if __name__ == "__main__":
    key = jax.random.PRNGKey(0)
    k1, k2 = jax.random.split(key)
    N, C, H, W = 2, 4, 16, 16
    # Predictions in (0, 1) (as expected by BCELoss), binary targets.
    yhat = jax.nn.sigmoid(jax.random.normal(k1, (N, C, H, W), jnp.float32))
    y = (jax.random.uniform(k2, (N, C, H, W), jnp.float32) > 0.5).astype(jnp.float32)

    loss = edge_loss_bce(yhat, y, alpha=0.5)
    jax.block_until_ready(loss)

    ref = _edge_loss_bce_ref(yhat, y, 0.5)
    if not jnp.allclose(loss, ref, rtol=1e-4, atol=1e-5):
        raise AssertionError(f"kernel={float(loss)} ref={float(ref)}")
    print("KERNEL_OK")
</pallas_src>

<mosaic_0001>
module attributes {stable_mosaic.version = 11 : i64} {
  func.func @_edge_loss_bce_kernel(%arg0: i32, %arg1: memref<2x16x16xf32, #tpu.memory_space<vmem>>, %arg2: memref<2x16x16xf32, #tpu.memory_space<vmem>>, %arg3: memref<1x2x128xf32, #tpu.memory_space<vmem>>) attributes {dimension_semantics = [#tpu.dimension_semantics<parallel>], iteration_bounds = array<i64: 4>, scalar_prefetch = 0 : i64, scratch_operands = 0 : i64, tpu.core_type = #tpu.core_type<tc>, window_params = [{transform_indices = @transform_0, window_bounds = array<i64: 2, 16, 16>}, {transform_indices = @transform_1, window_bounds = array<i64: 2, 16, 16>}, {transform_indices = @transform_2, window_bounds = array<i64: 1, 2, 128>}]} {
    %c0 = arith.constant 0 : index
    %c0_0 = arith.constant 0 : index
    %c0_1 = arith.constant 0 : index
    %0 = vector.load %arg1[%c0, %c0_0, %c0_1] : memref<2x16x16xf32, #tpu.memory_space<vmem>>, vector<2x16x16xf32>
    %c0_2 = arith.constant 0 : index
    %c0_3 = arith.constant 0 : index
    %c0_4 = arith.constant 0 : index
    %1 = vector.load %arg2[%c0_2, %c0_3, %c0_4] : memref<2x16x16xf32, #tpu.memory_space<vmem>>, vector<2x16x16xf32>
    %2 = math.log %0 : vector<2x16x16xf32>
    %cst = arith.constant -1.000000e+02 : f32
    %3 = vector.broadcast %cst : f32 to vector<2x16x16xf32>
    %4 = arith.maximumf %2, %3 : vector<2x16x16xf32>
    %cst_5 = arith.constant 1.000000e+00 : f32
    %5 = vector.broadcast %cst_5 : f32 to vector<2x16x16xf32>
    %6 = arith.subf %5, %0 : vector<2x16x16xf32>
    %7 = math.log %6 : vector<2x16x16xf32>
    %cst_6 = arith.constant -1.000000e+02 : f32
    %8 = vector.broadcast %cst_6 : f32 to vector<2x16x16xf32>
    %9 = arith.maximumf %7, %8 : vector<2x16x16xf32>
    %10 = arith.subf %4, %9 : vector<2x16x16xf32>
    %11 = arith.mulf %1, %10 : vector<2x16x16xf32>
    %12 = arith.addf %11, %9 : vector<2x16x16xf32>
    %13 = vector.shape_cast %12 : vector<2x16x16xf32> to vector<1x2x16x16xf32>
    %cst_7 = arith.constant dense<0.000000e+00> : vector<1xf32>
    %14 = vector.multi_reduction <add>, %13, %cst_7 [1, 2, 3] : vector<1x2x16x16xf32> to vector<1xf32>
    %15 = vector.shape_cast %14 : vector<1xf32> to vector<1x1x1x1xf32>
    %16 = vector.extract %15[0, 0, 0, 0] : f32 from vector<1x1x1x1xf32>
    %17 = arith.subf %0, %1 : vector<2x16x16xf32>
    %cst_8 = arith.constant 0.000000e+00 : f32
    %18 = vector.broadcast %cst_8 : f32 to vector<2x16x1xf32>
    %cst_9 = arith.constant 0.000000e+00 : f32
    %19 = vector.broadcast %cst_9 : f32 to vector<2x1x16xf32>
    %20 = vector.extract_strided_slice %17 {offsets = [0, 0, 0], sizes = [2, 16, 15], strides = [1, 1, 1]} : vector<2x16x16xf32> to vector<2x16x15xf32>
    %21 = tpu.concatenate %18, %20 in 2 : vector<2x16x1xf32>, vector<2x16x15xf32> -> vector<2x16x16xf32>
    %22 = vector.extract_strided_slice %17 {offsets = [0, 0, 1], sizes = [2, 16, 15], strides = [1, 1, 1]} : vector<2x16x16xf32> to vector<2x16x15xf32>
    %23 = tpu.concatenate %22, %18 in 2 : vector<2x16x15xf32>, vector<2x16x1xf32> -> vector<2x16x16xf32>
    %24 = arith.subf %23, %21 : vector<2x16x16xf32>
    %25 = arith.addf %21, %17 : vector<2x16x16xf32>
    %26 = arith.addf %25, %23 : vector<2x16x16xf32>
    %27 = arith.addf %26, %17 : vector<2x16x16xf32>
    %28 = vector.extract_strided_slice %24 {offsets = [0, 0, 0], sizes = [2, 15, 16], strides = [1, 1, 1]} : vector<2x16x16xf32> to vector<2x15x16xf32>
    %29 = tpu.concatenate %19, %28 in 1 : vector<2x1x16xf32>, vector<2x15x16xf32> -> vector<2x16x16xf32>
    %30 = arith.addf %29, %24 : vector<2x16x16xf32>
    %31 = vector.extract_strided_slice %24 {offsets = [0, 1, 0], sizes = [2, 15, 16], strides = [1, 1, 1]} : vector<2x16x16xf32> to vector<2x15x16xf32>
    %32 = tpu.concatenate %31, %19 in 1 : vector<2x15x16xf32>, vector<2x1x16xf32> -> vector<2x16x16xf32>
    %33 = arith.addf %30, %32 : vector<2x16x16xf32>
    %34 = arith.addf %33, %24 : vector<2x16x16xf32>
    %35 = vector.extract_strided_slice %27 {offsets = [0, 1, 0], sizes = [2, 15, 16], strides = [1, 1, 1]} : vector<2x16x16xf32> to vector<2x15x16xf32>
    %36 = tpu.concatenate %35, %19 in 1 : vector<2x15x16xf32>, vector<2x1x16xf32> -> vector<2x16x16xf32>
    %37 = vector.extract_strided_slice %27 {offsets = [0, 0, 0], sizes = [2, 15, 16], strides = [1, 1, 1]} : vector<2x16x16xf32> to vector<2x15x16xf32>
    %38 = tpu.concatenate %19, %37 in 1 : vector<2x1x16xf32>, vector<2x15x16xf32> -> vector<2x16x16xf32>
    %39 = arith.subf %36, %38 : vector<2x16x16xf32>
    %40 = vector.extract_strided_slice %26 {offsets = [0, 0, 0], sizes = [2, 15, 16], strides = [1, 1, 1]} : vector<2x16x16xf32> to vector<2x15x16xf32>
    %41 = tpu.concatenate %19, %40 in 1 : vector<2x1x16xf32>, vector<2x15x16xf32> -> vector<2x16x16xf32>
    %42 = vector.extract_strided_slice %26 {offsets = [0, 1, 0], sizes = [2, 15, 16], strides = [1, 1, 1]} : vector<2x16x16xf32> to vector<2x15x16xf32>
    %43 = tpu.concatenate %42, %19 in 1 : vector<2x15x16xf32>, vector<2x1x16xf32> -> vector<2x16x16xf32>
    %44 = arith.subf %41, %43 : vector<2x16x16xf32>
    %45 = arith.mulf %34, %34 : vector<2x16x16xf32>
    %46 = arith.mulf %39, %39 : vector<2x16x16xf32>
    %47 = arith.addf %45, %46 : vector<2x16x16xf32>
    %48 = arith.mulf %33, %33 : vector<2x16x16xf32>
    %49 = arith.mulf %44, %44 : vector<2x16x16xf32>
    %50 = arith.addf %48, %49 : vector<2x16x16xf32>
    %cst_10 = arith.constant 2.000000e+00 : f32
    %51 = vector.broadcast %cst_10 : f32 to vector<2x16x16xf32>
    %52 = arith.mulf %51, %50 : vector<2x16x16xf32>
    %53 = arith.addf %47, %52 : vector<2x16x16xf32>
    %54 = vector.shape_cast %53 : vector<2x16x16xf32> to vector<1x2x16x16xf32>
    %cst_11 = arith.constant dense<0.000000e+00> : vector<1xf32>
    %55 = vector.multi_reduction <add>, %54, %cst_11 [1, 2, 3] : vector<1x2x16x16xf32> to vector<1xf32>
    %56 = vector.shape_cast %55 : vector<1xf32> to vector<1x1x1x1xf32>
    %57 = vector.extract %56[0, 0, 0, 0] : f32 from vector<1x1x1x1xf32>
    %58 = tpu.iota {dimensions = array<i32: 0>} : vector<2x128xi32>
    %c0_i32 = arith.constant 0 : i32
    %59 = vector.broadcast %c0_i32 : i32 to vector<2x128xi32>
    %60 = arith.cmpi eq, %58, %59 : vector<2x128xi32>
    %61 = vector.broadcast %57 : f32 to vector<2x128xf32>
    %62 = vector.broadcast %16 : f32 to vector<2x128xf32>
    %63 = arith.select %60, %61, %62 : vector<2x128xi1>, vector<2x128xf32>
    %c0_12 = arith.constant 0 : index
    %c0_13 = arith.constant 0 : index
    %c0_14 = arith.constant 0 : index
    %64 = vector.load %arg3[%c0_12, %c0_13, %c0_14] : memref<1x2x128xf32, #tpu.memory_space<vmem>>, vector<1x2x128xf32>
    %65 = vector.shape_cast %64 : vector<1x2x128xf32> to vector<2x128xf32>
    %66 = vector.shape_cast %63 : vector<2x128xf32> to vector<1x2x128xf32>
    tpu.vector_store %arg3[%c0_12, %c0_13, %c0_14], %66 {strides = array<i32>} : memref<1x2x128xf32, #tpu.memory_space<vmem>>, vector<1x2x128xf32>,
    return
  }
  func.func @transform_0(%arg0: i32) -> (i32, i32, i32) {
    %c0_i32 = arith.constant 0 : i32
    %c0_i32_0 = arith.constant 0 : i32
    %c0_i32_1 = arith.constant 0 : i32
    return %arg0, %c0_i32, %c0_i32_0 : i32, i32, i32
  }
  func.func @transform_1(%arg0: i32) -> (i32, i32, i32) {
    %c0_i32 = arith.constant 0 : i32
    %c0_i32_0 = arith.constant 0 : i32
    %c0_i32_1 = arith.constant 0 : i32
    return %arg0, %c0_i32, %c0_i32_0 : i32, i32, i32
  }
  func.func @transform_2(%arg0: i32) -> (i32, i32, i32) {
    %c0_i32 = arith.constant 0 : i32
    %c0_i32_0 = arith.constant 0 : i32
    %c0_i32_1 = arith.constant 0 : i32
    return %arg0, %c0_i32, %c0_i32_0 : i32, i32, i32
  }
}

</mosaic_0001>

<bundles_post_ra>
// kernel: edge_loss_bce.1
= control target key start
LH: loop header
LB: loop body
LE: loop exit
PB: predicated region body
PF: predicated region fallthrough
CT: control target
= control target key end

     0   :  { %7 = vsyncpa [#allocation3], 0  ;;  %s1034_s0 = inlined_call_operand.hbm [shape: f32[8,16,16], index: 0, kind: input, shape index: {}]   ;;  %s1035_s1 = inlined_call_operand.hbm [shape: f32[8,16,16], index: 1, kind: input, shape index: {}]   ;;  %s1036_s2 = inlined_call_operand.vmem [shape: f32[4,2,128], index: 2, kind: output, shape index: {}]  }
   0x1   :  { %9 = vsyncpa [#allocation3 + $0x1], 0 }
   0x2   :  { %10 = vsyncpa [#allocation5], 0 }
   0x3   :  { %12 = vsyncpa [#allocation5 + $0x1], 0  ;;  %s784_s9 = smov 0   ;;  %s786_s10 = smov 0  }
   0x4   :  { %s788_s11 = smov 0   ;;  %s790_s12 = smov 0  }
   0x5 LB: > { %s803_s13 = sadd.s32 4294967295, %s761_s12   ;;  %s806_s14 = sadd.s32 1, %s761_s12   ;;  %s761_s12 = sphi %s790_s12, %s1046_s12   ;;  %s757_s11 = sphi %s788_s11, %s1045_s11   ;;  %s753_s10 = sphi %s786_s10, %s1044_s10   ;;  %s749_s9 = sphi %s784_s9, %s1043_s9  }
   0x6   : > { %s22_s15 = ssub.s32 %s761_s12, %s806_s14  ;;  %s25_s16 = sadd.s32 1, %s757_s11 }
   0x7   : > { %p23_p0 = scmp.eq.s32.totalorder %s22_s15, 0  ;;  %p32_p1 = scmp.ne.s32.totalorder %s757_s11, %s753_s10 }
   0x8   : > { %p33_p2 = scmp.eq.s32.totalorder %s761_s12, 0  ;;  %p38_p3 = scmp.ne.s32.totalorder %s753_s10, %s749_s9 }
   0x9   : > { %s816_s17 = scalar_select %p23_p0, %s757_s11, %s25_s16  }
   0xa   : > { %p34_p4 = por %p33_p2, %p32_p1  ;;  %p39_p5 = scmp.eq.s32.totalorder %s803_s13, 0 }
   0xb   : > { %p614_p6 = scmp.lt.s32.totalorder %s761_s12, 4  ;;  %s825_s19 = sand.u32 1, %s757_s11  }
   0xc   : > { %p820_p7 = por %p39_p5, %p38_p3  ;;  %s581_s20 = sshll.u32 %s825_s19, 5 }
   0xd   : > { %s596_s21 = sshll.u32 %s761_s12, 9  ;;  %s118_s25 = scalar_lea.vmem [#allocation2], %s581_s20 }
   0xe   : > { %s1038_s18 = scalar_select %p820_p7, 1, 0 }
   0xf   : > { %s834_s24 = scalar_lea.hbm %s1034_s0, %s596_s21  ;;  %s126_s26 = sshll.u32 %s118_s25, 4  ;;  %s838_s26 = int_to_ptr.vmem [resolvable:$true] %s126_s26 }
  0x10   : > { %p840_p8 = pnand %p614_p6, %p34_p4  ;;  %s115_s28 = scalar_lea.sflag [#allocation3], %s825_s19 }
  0x11   : > { %s667_s29 = scalar_lea.hbm %s834_s24, 512  ;;  %s672_s4 = scalar_lea.hbm %s1034_s0, 2048 }
  0x12   : > { %p668_p10 = scmp.ne.s32.totalorder %s834_s24, %s667_s29  ;;  %p669_p11 = pneg %p840_p8 }
  0x13   : > { %p673_p0 = scmp.lt.s32.totalorder %s834_s24, %s1034_s0  ;;  %p674_p1 = scmp.lt.s32.totalorder %s672_s4, %s667_s29 }
  0x14   : > { %p670_p12 = pnand %p669_p11, %p668_p10 }
  0x15   : > { %p675_p2 = por %p674_p1, %p673_p0 }
  0x16   : > { %p671_p13 = pneg %p670_p12 }
  0x18   : > { %p676_p3 = pnand %p675_p2, %p671_p13 }
  0x1a   : > { %679 = shalt.err (!%p676_p3)
}
  0x1b   : > { %s680_s7 = scalar_lea.vmem %s838_s26, 512  ;;  %s763_s8 = smov [#allocation2]  }
  0x1c   : > { %p681_p4 = scmp.ne.s32.totalorder %s838_s26, %s680_s7  ;;  %s685_s9 = sshll.u32 %s763_s8, 4  ;;  %s686_s9 = int_to_ptr.vmem [resolvable:$false] %s685_s9 }
  0x1d   : > { %s687_s15 = scalar_lea.vmem %s686_s9, 1024  ;;  %p688_p10 = scmp.lt.s32.totalorder %s838_s26, %s686_s9 }
  0x1e   : > { %p683_p5 = pnand %p681_p4, %p669_p11  ;;  %p689_p12 = scmp.lt.s32.totalorder %s687_s15, %s680_s7 }
  0x20   : > { %p684_p6 = pneg %p683_p5  ;;  %p690_p9 = por %p689_p12, %p688_p10 }
  0x22   : > { %p691_p0 = pnand %p690_p9, %p684_p6 }
  0x24   : > { %694 = shalt.err (!%p691_p0)
}
  0x25   : > { %s764_s16 = smov 128   ;;  %s765_s22 = smov 8  }
  0x26   : > { %610 = dma.hbm_to_vmem [thread:$0]  (!%p840_p8), %s834_s24, 512, %s838_s26, %s115_s28, %s764_s16, %s764_s16, %s765_s22  }
  0x27   : > { %p156_p9 = scmp.lt.s32.totalorder %s761_s12, 5  ;;  %s881_s29 = scalar_lea.hbm %s1035_s1, %s596_s21 }
  0x28   : > { %p1040_p13 = scmp.ge.s32.totalorder %s761_s12, 1  ;;  %s140_s3 = scalar_lea.vmem [#allocation4], %s581_s20 }
  0x29   : > { %s148_s4 = sshll.u32 %s140_s3, 4  ;;  %s137_s24 = scalar_lea.sflag [#allocation5], %s825_s19  ;;  %s891_s4 = int_to_ptr.vmem [resolvable:$true] %s148_s4 }
  0x2a   : > { %p885_p1 = pnand %p1040_p13, %p156_p9  ;;  %s695_s26 = scalar_lea.hbm %s881_s29, 512 }
  0x2b   : > { %p696_p2 = scmp.ne.s32.totalorder %s881_s29, %s695_s26  ;;  %s700_s28 = scalar_lea.hbm %s1035_s1, 2048 }
  0x2c   : > { %p701_p5 = scmp.lt.s32.totalorder %s881_s29, %s1035_s1  ;;  %p702_p6 = scmp.lt.s32.totalorder %s700_s28, %s695_s26 }
  0x2d   : > { %p698_p3 = pnand %p696_p2, %p669_p11 }
  0x2e   : > { %p703_p10 = por %p702_p6, %p701_p5 }
  0x2f   : > { %p699_p4 = pneg %p698_p3 }
  0x31   : > { %p704_p12 = pnand %p703_p10, %p699_p4 }
  0x33   : > { %707 = shalt.err (!%p704_p12)
}
  0x34   : > { %s708_s19 = scalar_lea.vmem %s891_s4, 512  ;;  %s766_s20 = smov [#allocation4]  }
  0x35   : > { %p709_p0 = scmp.ne.s32.totalorder %s891_s4, %s708_s19  ;;  %s713_s7 = sshll.u32 %s766_s20, 4  ;;  %s714_s7 = int_to_ptr.vmem [resolvable:$false] %s713_s7 }
  0x36   : > { %s715_s8 = scalar_lea.vmem %s714_s7, 1024  ;;  %p716_p2 = scmp.lt.s32.totalorder %s891_s4, %s714_s7 }
  0x37   : > { %p711_p9 = pnand %p709_p0, %p669_p11  ;;  %p717_p3 = scmp.lt.s32.totalorder %s715_s8, %s708_s19 }
  0x39   : > { %p712_p13 = pneg %p711_p9  ;;  %p718_p7 = por %p717_p3, %p716_p2 }
  0x3b   : > { %p719_p5 = pnand %p718_p7, %p712_p13 }
  0x3d   : > { %722 = shalt.err (!%p719_p5)
}
  0x3e   : > { %613 = dma.hbm_to_vmem [thread:$0]  (!%p840_p8), %s881_s29, 512, %s891_s4, %s137_s24, %s764_s16, %s764_s16, %s765_s22  }
  0x3f   : > { %160 = sbr.rel (%p885_p1) target bundleno = 438 (0x1b6), region = 28  ;;  %s162_s9 = sand.u32 (!%p885_p1), 1, %s753_s10  }
  0x40   : > { %s590_s15 = sshll.u32 (!%p885_p1), %s162_s9, 5  ;;  %s163_s23 = scalar_lea.sflag (!%p885_p1), [#allocation3], %s162_s9 }
  0x41   : > { %s166_s25 = scalar_lea.vmem (!%p885_p1), [#allocation2], %s590_s15  ;;  %p1042_p11 = scmp.ne.s32.totalorder (!%p885_p1), %s1038_s18, 0 }
  0x44   : > { %740 = dma.done.wait (%p1042_p11), %s163_s23, 512  }
  0x45   : > { %742 = vsyncadd (%p1042_p11), %s163_s23, 4294966784  ;;  %s172_s27 = scalar_lea.sflag [#allocation5], %s162_s9  ;;  %s175_s3 = scalar_lea.vmem [#allocation4], %s590_s15 }
  0x46   : > { %744 = dma.done.wait (%p1042_p11), %s172_s27, 512  }
  0x47   : > { %746 = vsyncadd (%p1042_p11), %s172_s27, 4294966784  ;;  %v206_v0 = vld [vmem:[%s166_s25] sm:$0xff]  ;;  %v207_v2 = vld [vmem:[%s166_s25 + $0x8] sm:$0xff]  ;;  %s767_s16 = smov 127   ;;  %s768_s22 = smov 1   ;;  %vm254_vm0 = vcmask 130048  }
  0x48   : > { %v210_v1 = vld [vmem:[%s175_s3] sm:$0xff]  ;;  %651 = vlog2.f32 %v206_v0  ;;  %v226_v4 = vsub.f32 1.0, %v206_v0  ;;  %v211_v5 = vld [vmem:[%s175_s3 + $0x8] sm:$0xff]  ;;  %v227_v6 = vsub.f32 1.0, %v207_v2  ;;  %v208_v7 = vld [vmem:[%s166_s25 + $0x10] sm:$0xff]  ;;  %vm308_vm1 = vcmask 121856  }
  0x49   : > { %v930_v3 = vsub.f32 %v206_v0, %v210_v1  ;;  %653 = vlog2.f32 %v207_v2  ;;  %v934_v8 = vsub.f32 %v207_v2, %v211_v5  ;;  %v209_v9 = vld [vmem:[%s166_s25 + $0x18] sm:$0xff]  ;;  %v228_v10 = vsub.f32 1.0, %v208_v7  ;;  %v212_v12 = vld [vmem:[%s175_s3 + $0x10] sm:$0xff]  ;;  %p202_p7 = scmp.lt.s32.totalorder %s803_s13, 3 }
  0x4a   : > { %655 = vlog2.f32 %v226_v4  ;;  %v213_v11 = vld [vmem:[%s175_s3 + $0x18] sm:$0xff]  ;;  %v229_v13 = vsub.f32 1.0, %v209_v9  ;;  %v940_v15 = vsub.f32 %v208_v7, %v212_v12  ;;  %vm291_vm2 = vcmask 7168  }
  0x4b   : > { %296 = vrot.lane.b32.xlu1 %v930_v3, %s767_s16  ;;  %279 = vrot.lane.b32.xlu0 %v930_v3, %s768_s22  ;;  %657 = vlog2.f32 %v227_v6  ;;  %v938_v14 = vsub.f32 %v209_v9, %v213_v11  ;;  %vm333_vm3 = vcmask 1040384   ;;  %vm350_vm4 = vcmask 1046528   ;;  %s1048_s13 = smov (!%p202_p7, %s803_s13), 3 }
  0x4c   : > { %659 = vlog2.f32 %v209_v9  ;;  %s592_s18 = sshll.u32 %s1048_s13, 1 }
  0x4d   : > { %661 = vlog2.f32 %v208_v7  ;;  %s205_s24 = scalar_lea.vmem %s1036_s2, %s592_s18 }
  0x4e   : > { %663 = vlog2.f32 %v228_v10 }
  0x4f   : > { %298 = vrot.lane.b32.xlu1 %v934_v8, %s767_s16  ;;  %281 = vrot.lane.b32.xlu0 %v934_v8, %s768_s22  ;;  %665 = vlog2.f32 %v229_v13 }
  0x53   : > { %285 = vrot.lane.b32.xlu1 %v938_v14, %s768_s22  ;;  %283 = vrot.lane.b32.xlu0 %v940_v15, %s768_s22 }
  0x55   : > { %v652_v16 = vpop.eup %651 }
  0x56   : > { %v654_v17 = vpop.eup %653  ;;  %v215_v18 = vmul.f32 0.6931472, %v652_v16 }
  0x57   : > { %302 = vrot.lane.b32.xlu1 %v938_v14, %s767_s16  ;;  %300 = vrot.lane.b32.xlu0 %v940_v15, %s767_s16  ;;  %v656_v19 = vpop.eup %655  ;;  %v217_v20 = vmul.f32 0.6931472, %v654_v17 }
  0x58   : > { %v658_v21 = vpop.eup %657  ;;  %v222_v22 = vmax.f32 %v215_v18, -100.0  ;;  %v231_v23 = vmul.f32 0.6931472, %v656_v19 }
  0x59   : > { %v660_v24 = vpop.eup %659  ;;  %v223_v25 = vmax.f32 %v217_v20, -100.0  ;;  %v233_v26 = vmul.f32 0.6931472, %v658_v21 }
  0x5a   : > { %v662_v27 = vpop.eup %661  ;;  %v238_v28 = vmax.f32 %v231_v23, -100.0  ;;  %v221_v29 = vmul.f32 0.6931472, %v660_v24 }
  0x5b   : > { %v664_v30 = vpop.eup %663  ;;  %v239_v31 = vmax.f32 %v233_v26, -100.0  ;;  %v219_v32 = vmul.f32 0.6931472, %v662_v27 }
  0x5c   : > { %v666_v33 = vpop.eup %665  ;;  %v242_v34 = vsub.f32 %v222_v22, %v238_v28  ;;  %v235_v35 = vmul.f32 0.6931472, %v664_v30  ;;  %v225_v40 = vmax.f32 %v221_v29, -100.0 }
  0x5d   : > { %v243_v36 = vsub.f32 %v223_v25, %v239_v31  ;;  %v224_v37 = vmax.f32 %v219_v32, -100.0  ;;  %v237_v38 = vmul.f32 0.6931472, %v666_v33 }
  0x5e   : > { %v246_v39 = vmul.f32 %v242_v34, %v210_v1  ;;  %v240_v41 = vmax.f32 %v235_v35, -100.0 }
  0x5f   : > { %v247_v42 = vmul.f32 %v243_v36, %v211_v5  ;;  %v241_v43 = vmax.f32 %v237_v38, -100.0 }
  0x60   : > { %v244_v44 = vsub.f32 %v224_v37, %v240_v41  ;;  %v250_v47 = vadd.f32 %v246_v39, %v238_v28 }
  0x61   : > { %v245_v45 = vsub.f32 %v225_v40, %v241_v43  ;;  %v251_v48 = vadd.f32 %v247_v42, %v239_v31 }
  0x62   : > { %v248_v46 = vmul.f32 %v244_v44, %v212_v12  ;;  %v255_v51 = vsel %vm254_vm0, %v250_v47, 0.0 }
  0x63   : > { %v249_v49 = vmul.f32 %v245_v45, %v213_v11  ;;  %v256_v52 = vsel %vm254_vm0, %v251_v48, 0.0 }
  0x64   : > { %v252_v50 = vadd.f32 %v248_v46, %v240_v41  ;;  %v257_v53 = vadd.f32 %v256_v52, %v255_v51 }
  0x65   : > { %v253_v54 = vadd.f32 %v249_v49, %v241_v43 }
  0x66   : > { %v258_v55 = vsel %vm254_vm0, %v252_v50, 0.0 }
  0x67   : > { %v259_v56 = vadd.f32 %v258_v55, %v257_v53  ;;  %v260_v57 = vsel %vm254_vm0, %v253_v54, 0.0 }
  0x69   : > { %v261_v58 = vadd.f32 %v260_v57, %v259_v56 }
  0x76   : > { %262 = vadd.xlane.f32.xlu0 %v261_v58 }
  0xbd   : > { %v297_v59 = vpop.permute.xlu1 %296  ;;  %v280_v60 = vpop.permute.xlu0 %279 }
  0xbe   : > { %v309_v61 = vsel %vm308_vm1, %v297_v59, 0.0  ;;  %v292_v62 = vsel %vm291_vm2, 0.0, %v280_v60 }
  0xbf   : > { %v952_v63 = vsub.f32 %v309_v61, %v292_v62  ;;  %v317_v0 = vadd.f32 %v292_v62, %v930_v3 }
  0xc1   : > { %v321_v1 = vadd.f32 %v317_v0, %v309_v61  ;;  %v334_v2 = vrot.slane %v952_v63, 7  ;;  %v299_v4 = vpop.permute.xlu1 %298  ;;  %v282_v5 = vpop.permute.xlu0 %281  ;;  %v351_v16 = vrot.slane %v952_v63, 1 }
  0xc2   : > { %v310_v6 = vsel %vm308_vm1, %v299_v4, 0.0  ;;  %v293_v7 = vsel %vm291_vm2, 0.0, %v282_v5 }
  0xc3   : > { %v959_v9 = vadd.f32 %v321_v1, %v930_v3  ;;  %v407_v10 = vrot.slane %v321_v1, 7  ;;  %v344_v11 = vsel %vm333_vm3, 0.0, %v334_v2  ;;  %v314_v12 = vsub.f32 %v310_v6, %v293_v7 }
  0xc4   : > { %v318_v13 = vadd.f32 %v293_v7, %v934_v8  ;;  %v346_v3 = vadd.f32 %v344_v11, %v952_v63  ;;  %v419_v26 = vrot.slane %v321_v1, 1 }
  0xc5   : > { %v387_v17 = vrot.slane %v959_v9, 7  ;;  %v286_v18 = vpop.permute.xlu1 %285  ;;  %v284_v19 = vpop.permute.xlu0 %283  ;;  %v335_v21 = vrot.slane %v314_v12, 7  ;;  %v352_v22 = vrot.slane %v314_v12, 1  ;;  %v375_v24 = vrot.slane %v959_v9, 1 }
  0xc6   : > { %v322_v20 = vadd.f32 %v318_v13, %v310_v6  ;;  %v295_v23 = vsel %vm291_vm2, 0.0, %v286_v18  ;;  %v969_v25 = vsel %vm333_vm3, 0.0, %v407_v10  ;;  %v294_v30 = vsel %vm291_vm2, 0.0, %v284_v19 }
  0xc7   : > { %v336_v28 = vsel %vm333_vm3, %v334_v2, %v335_v21  ;;  %v320_v29 = vadd.f32 %v295_v23, %v938_v14  ;;  %v397_v31 = vsel %vm333_vm3, 0.0, %v387_v17  ;;  %v361_v37 = vsel %vm350_vm4, %v352_v22, 0.0 }
  0xc8   : > { %v326_v27 = vadd.f32 %v322_v20, %v934_v8  ;;  %v347_v32 = vadd.f32 %v336_v28, %v314_v12  ;;  %v408_v33 = vrot.slane %v322_v20, 7  ;;  %v420_v34 = vrot.slane %v322_v20, 1 }
  0xc9   : > { %v303_v35 = vpop.permute.xlu1 %302  ;;  %v301_v36 = vpop.permute.xlu0 %300  ;;  %v319_v43 = vadd.f32 %v294_v30, %v940_v15  ;;  %v353_v44 = vsel %vm350_vm4, %v351_v16, %v352_v22 }
  0xca   : > { %v376_v38 = vrot.slane %v326_v27, 1  ;;  %v312_v8 = vsel %vm308_vm1, %v303_v35, 0.0  ;;  %v311_v39 = vsel %vm308_vm1, %v301_v36, 0.0  ;;  %v981_v40 = vadd.f32 %v361_v37, %v347_v32 }
  0xcb   : > { %v409_v41 = vsel %vm333_vm3, %v407_v10, %v408_v33  ;;  %v429_v42 = vsel %vm350_vm4, %v420_v34, 0.0  ;;  %v316_v46 = vsub.f32 %v312_v8, %v295_v23  ;;  %v324_v47 = vadd.f32 %v320_v29, %v312_v8 }
  0xcc   : > { %v432_v45 = vsub.f32 %v409_v41, %v429_v42  ;;  %v388_v48 = vrot.slane %v326_v27, 7  ;;  %v421_v49 = vsel %vm350_vm4, %v419_v26, %v420_v34  ;;  %v315_v50 = vsub.f32 %v311_v39, %v294_v30 }
  0xcd   : > { %v323_v51 = vadd.f32 %v319_v43, %v311_v39  ;;  %v385_v52 = vsel %vm350_vm4, %v376_v38, 0.0  ;;  %v328_v53 = vadd.f32 %v324_v47, %v938_v14  ;;  %v338_v54 = vrot.slane %v316_v46, 7 }
  0xce   : > { %v355_v55 = vrot.slane %v316_v46, 1  ;;  %v368_v56 = vadd.f32 %v981_v40, %v314_v12  ;;  %v452_v57 = vmul.f32 %v432_v45, %v432_v45  ;;  %v363_v59 = vadd.f32 %v353_v44, %v346_v3 }
  0xcf   : > { %v327_v58 = vadd.f32 %v323_v51, %v940_v15  ;;  %v411_v61 = vrot.slane %v324_v47, 7  ;;  %v423_v62 = vrot.slane %v324_v47, 1  ;;  %v337_v0 = vrot.slane %v315_v50, 7 }
  0xd0   : > { %v362_v60 = vsel %vm350_vm4, %v355_v55, 0.0  ;;  %v379_v1 = vrot.slane %v328_v53, 1  ;;  %v354_v2 = vrot.slane %v315_v50, 1  ;;  %v410_v14 = vrot.slane %v323_v51, 7 }
  0xd1   : > { %v378_v4 = vrot.slane %v327_v58, 1  ;;  %v390_v5 = vrot.slane %v327_v58, 7  ;;  %v345_v6 = vsel %vm333_vm3, 0.0, %v337_v0  ;;  %v422_v7 = vrot.slane %v323_v51, 1 }
  0xd2   : > { %v339_v10 = vsel %vm333_vm3, %v337_v0, %v338_v54  ;;  %v391_v11 = vrot.slane %v328_v53, 7  ;;  %v348_v12 = vadd.f32 %v345_v6, %v315_v50  ;;  %v356_v15 = vsel %vm350_vm4, %v354_v2, %v355_v55 }
  0xd3   : > { %v349_v13 = vadd.f32 %v339_v10, %v316_v46  ;;  %v398_v16 = vsel %vm333_vm3, 0.0, %v390_v5  ;;  %v418_v18 = vsel %vm333_vm3, 0.0, %v410_v14  ;;  %v424_v19 = vsel %vm350_vm4, %v422_v7, %v423_v62 }
  0xd4   : > { %v377_v20 = vsel %vm350_vm4, %v375_v24, %v376_v38  ;;  %v365_v21 = vadd.f32 %v356_v15, %v348_v12  ;;  %v433_v22 = vsub.f32 %v418_v18, %v424_v19  ;;  %v380_v3 = vsel %vm350_vm4, %v378_v4, %v379_v1 }
  0xd5   : > { %v366_v23 = vadd.f32 %v362_v60, %v349_v13  ;;  %v430_v26 = vsel %vm350_vm4, %v423_v62, 0.0  ;;  %v367_v27 = vadd.f32 %v363_v59, %v952_v63  ;;  %v389_v28 = vsel %vm333_vm3, %v387_v17, %v388_v48 }
  0xd6   : > { %v399_v29 = vsub.f32 %v377_v20, %v397_v31  ;;  %v369_v30 = vadd.f32 %v365_v21, %v315_v50  ;;  %v386_v32 = vsel %vm350_vm4, %v379_v1, 0.0  ;;  %v392_v33 = vsel %vm333_vm3, %v390_v5, %v391_v11 }
  0xd7   : > { %v400_v24 = vsub.f32 %v385_v52, %v389_v28  ;;  %v436_v34 = vmul.f32 %v368_v56, %v368_v56  ;;  %v370_v35 = vadd.f32 %v366_v23, %v316_v46  ;;  %v401_v36 = vsub.f32 %v380_v3, %v398_v16 }
  0xd8   : > { %v412_v37 = vsel %vm333_vm3, %v410_v14, %v411_v61  ;;  %v437_v38 = vmul.f32 %v369_v30, %v369_v30  ;;  %v453_v8 = vmul.f32 %v433_v22, %v433_v22  ;;  %v431_v63 = vsub.f32 %v969_v25, %v421_v49 }
  0xd9   : > { %v434_v39 = vsub.f32 %v412_v37, %v430_v26  ;;  %v402_v9 = vsub.f32 %v386_v32, %v392_v33  ;;  %v439_v41 = vmul.f32 %v399_v29, %v399_v29  ;;  %v440_v17 = vmul.f32 %v400_v24, %v400_v24 }
  0xda   : > { %v441_v31 = vmul.f32 %v401_v36, %v401_v36  ;;  %v435_v42 = vmul.f32 %v367_v27, %v367_v27  ;;  %v448_v43 = vmul.f32 %v981_v40, %v981_v40  ;;  %v449_v44 = vmul.f32 %v365_v21, %v365_v21 }
  0xdb   : > { %v450_v45 = vmul.f32 %v366_v23, %v366_v23  ;;  %v438_v47 = vmul.f32 %v370_v35, %v370_v35  ;;  %v444_v46 = vadd.f32 %v440_v17, %v436_v34  ;;  %v447_v50 = vmul.f32 %v363_v59, %v363_v59 }
  0xdc   : > { %v445_v48 = vadd.f32 %v441_v31, %v437_v38  ;;  %v451_v51 = vmul.f32 %v431_v63, %v431_v63  ;;  %v454_v52 = vmul.f32 %v434_v39, %v434_v39  ;;  %v456_v53 = vadd.f32 %v452_v57, %v448_v43 }
  0xdd   : > { %v457_v54 = vadd.f32 %v453_v8, %v449_v44  ;;  %v442_v25 = vmul.f32 %v402_v9, %v402_v9  ;;  %v443_v49 = vadd.f32 %v439_v41, %v435_v42  ;;  %v483_v28 = vlaneseq }
  0xde   : > { %v455_v55 = vadd.f32 %v451_v51, %v447_v50  ;;  %v458_v56 = vadd.f32 %v454_v52, %v450_v45  ;;  %v460_v58 = vmul.f32 2.0, %v456_v53 }
  0xdf   : > { %v461_v60 = vmul.f32 2.0, %v457_v54  ;;  %v446_v61 = vadd.f32 %v442_v25, %v438_v47  ;;  %v484_v29 = vshrl.u32 %v483_v28, 7 }
  0xe0   : > { %v459_v62 = vmul.f32 2.0, %v455_v55  ;;  %v462_v0 = vmul.f32 2.0, %v458_v56  ;;  %v464_v40 = vadd.f32 %v460_v58, %v444_v46 }
  0xe1   : > { %v465_v1 = vadd.f32 %v461_v60, %v445_v48  ;;  %vm485_vm5 = vcmp.eq.s32.totalorder %v484_v29, 0 }
  0xe2   : > { %v463_v2 = vadd.f32 %v459_v62, %v443_v49  ;;  %v468_v4 = vsel %vm254_vm0, %v464_v40, 0.0  ;;  %v466_v5 = vadd.f32 %v462_v0, %v446_v61 }
  0xe3   : > { %v470_v57 = vsel %vm254_vm0, %v465_v1, 0.0 }
  0xe4   : > { %v467_v59 = vsel %vm254_vm0, %v463_v2, 0.0  ;;  %v472_v7 = vsel %vm254_vm0, %v466_v5, 0.0 }
  0xe5   : > { %v469_v6 = vadd.f32 %v468_v4, %v467_v59 }
  0xe7   : > { %v471_v14 = vadd.f32 %v470_v57, %v469_v6 }
  0xe9   : > { %v473_v10 = vadd.f32 %v472_v7, %v471_v14 }
  0xeb   : > { %474 = vadd.xlane.f32.xlu1 %v473_v10 }
  0xff   : > { %v263_v11 = vpop.xlane.xlu0 %262 }
 0x100   : > { %v264_v12 = vrot.slane %v263_v11, 4 }
 0x102   : > { %v265_v15 = vadd.f32 %v264_v12, %v263_v11 }
 0x104   : > { %v266_v13 = vrot.slane %v265_v15, 2 }
 0x106   : > { %v267_v16 = vadd.f32 %v266_v13, %v265_v15 }
 0x108   : > { %v268_v18 = vrot.slane %v267_v16, 1 }
 0x10a   : > { %v269_v19 = vadd.f32 %v268_v18, %v267_v16 }
 0x10c   : > { %599 = vpush %v269_v19 }
 0x13d   : > { %s600_s29 = spop %599 }
 0x13e   : > { %v487_v30 = vstv %s600_s29 }
 0x174   : > { %v475_v20 = vpop.xlane.xlu1 %474 }
 0x175   : > { %v476_v21 = vrot.slane %v475_v20, 4 }
 0x177   : > { %v477_v22 = vadd.f32 %v476_v21, %v475_v20 }
 0x179   : > { %v478_v23 = vrot.slane %v477_v22, 2 }
 0x17b   : > { %v479_v3 = vadd.f32 %v478_v23, %v477_v22 }
 0x17d   : > { %v480_v26 = vrot.slane %v479_v3, 1 }
 0x17f   : > { %v481_v27 = vadd.f32 %v480_v26, %v479_v3 }
 0x181   : > { %601 = vpush %v481_v27 }
 0x1b2   : > { %s602_s26 = spop %601 }
 0x1b3   : > { %v486_v32 = vstv %s602_s26 }
 0x1b4   : > { %v488_v33 = vsel %vm485_vm5, %v486_v32, %v487_v30 }
 0x1b5   : > { %489 = vst [vmem:[%s205_s24] sm:$0x3] %v488_v33 }
 0x1b6 PF: > { %p15_p8 = scmp.ge.s32.totalorder %s806_s14, 6   ;;  %s1043_s9 = smov %s753_s10 }
 0x1b7   : > { %s1044_s10 = smov %s757_s11  ;;  %s1045_s11 = smov %s816_s17 }
 0x1b8   : > { %s1046_s12 = smov %s806_s14  ;;  %17 = sbr.rel (!%p15_p8) target bundleno = 5 (0x5), region = 81 }
 0x1bd   :  { %509 = vsyncpa [#allocation3], 1 }
 0x1be   :  { %511 = vsyncpa [#allocation3 + $0x1], 1 }
 0x1bf   :  { %512 = vsyncpa [#allocation5], 1 }
 0x1c0   :  { %514 = vsyncpa [#allocation5 + $0x1], 1 }

</bundles_post_ra>
